<compile_context>
chip_gen: v5e
topology: v5e:2x2
jax: 0.10.0
libtpu: 0.0.40
codegen_flags: <defaults>
</compile_context>

<pallas_src>
import math

import numpy as np
import jax
import jax.numpy as jnp
from jax.experimental import pallas as pl
from jax.experimental.pallas import tpu as pltpu


# ConvTranspose2d(k=4, s=2, p=1): output pixel (2a+py, 2b+px) accumulates
#   x[a+ry, b+rx] * W[:, :, ky, kx]  for (ry, ky) in _TAPS[py], (rx, kx) in _TAPS[px].
_TAPS = {0: ((0, 1), (-1, 3)), 1: ((1, 0), (0, 2))}

# Per-parity tap lists (ky, kx, ry, rx); also the row order of the packed weights.
_PARITY_TAPS = []
for _py in (0, 1):
    for _px in (0, 1):
        _PARITY_TAPS.append(
            [(ky, kx, ry, rx)
             for (ry, ky) in _TAPS[_py]
             for (rx, kx) in _TAPS[_px]])

# 8 distinct non-zero (ry, rx) offsets -> deduped boundary-mask bank.
_OFFSETS = [(ry, rx) for ry in (-1, 0, 1) for rx in (-1, 0, 1) if (ry, rx) != (0, 0)]


def _boundary_masks(H, W):
    """(8, 1, H*W) f32 {0,1} masks: validity of (a+ry, b+rx), one per offset."""
    rows = np.arange(H)[:, None]
    cols = np.arange(W)[None, :]
    out = []
    for (ry, rx) in _OFFSETS:
        ok = ((rows + ry >= 0) & (rows + ry < H) &
              (cols + rx >= 0) & (cols + rx < W))
        out.append(ok.reshape(1, H * W))
    return np.stack(out, axis=0).astype(np.float32)


def _make_convt_kernel(W, tc, HW):
    """Fused ReLU + 4 per-parity GEMMs + roll/mask overlap-add + BN partial stats."""

    def kernel(x_ref, w_ref, m_ref, y_ref, sum_ref, sq_ref):
        # x_ref: (1, Cin_pad, HW) bf16 ; w_ref: (16*tc, Cin_pad) bf16
        # m_ref: (8, 1, HW) f32        ; y_ref: (1, 4*tc, HW) bf16
        xr = jnp.maximum(x_ref[0], 0)                       # fused ReLU (bf16)
        s_acc = jnp.zeros((tc, 1), jnp.float32)
        q_acc = jnp.zeros((tc, 1), jnp.float32)
        for p, taps in enumerate(_PARITY_TAPS):
            # One GEMM per output parity: the live f32 intermediate is (4*tc, HW)
            # (4x smaller than a single 16-tap GEMM) and the next parity's MXU
            # work overlaps this parity's VPU/store epilogue.
            wp = w_ref[pl.ds(p * 4 * tc, 4 * tc), :]
            tp = jnp.dot(wp, xr, preferred_element_type=jnp.float32)   # (4*tc, HW)
            acc = jnp.zeros((tc, HW), jnp.float32)
            for t, (ky, kx, ry, rx) in enumerate(taps):
                plane = tp[t * tc:(t + 1) * tc, :]
                s = ry * W + rx
                if s == 0:
                    acc = acc + plane                        # centre tap: no mask
                else:
                    # circular lane rotate (XLU); masks zero exactly the wrapped /
                    # out-of-bounds lanes, so result == zero-filled shift.
                    rolled = pltpu.roll(plane, (-s) % HW, 1)
                    acc = acc + rolled * m_ref[_OFFSETS.index((ry, rx))]
            y_ref[0, pl.ds(p * tc, tc), :] = acc.astype(y_ref.dtype)
            s_acc = s_acc + jnp.sum(acc, axis=1, keepdims=True)   # BN partials (f32)
            q_acc = q_acc + jnp.sum(acc * acc, axis=1, keepdims=True)
        sum_ref[0] = s_acc
        sq_ref[0] = q_acc

    return kernel


def _make_bn_concat_kernel(n_y_tiles):
    """Fused BatchNorm normalize (per-channel affine) + skip-concat copy."""

    def kernel(y_ref, sc_ref, sh_ref, skip_ref, o_ref):
        j = pl.program_id(1)

        @pl.when(j < n_y_tiles)                 # conv channels: normalize
        def _():
            y = y_ref[0].astype(jnp.float32)
            o_ref[0] = (y * sc_ref[...] + sh_ref[...]).astype(o_ref.dtype)

        @pl.when(j >= n_y_tiles)                # skip channels: fused torch.cat copy
        def _():
            o_ref[0] = skip_ref[0].astype(o_ref.dtype)

    return kernel


def _vmem_params():
    """(vmem_limit_bytes, per-step block byte budget), generation-aware."""
    try:
        kind = jax.devices()[0].device_kind.lower()
    except Exception:
        kind = ""
    if "v5" in kind or "v6" in kind:            # 128 MiB physical VMEM
        return 64 * 1024 * 1024, 24 * 1024 * 1024
    return 32 * 1024 * 1024, 12 * 1024 * 1024   # v7x (64 MiB) / unknown: conservative


def _pick_cout_tile(Cout, cin_pad, HW, budget):
    """Largest Cout tile whose kernel-A per-step footprint fits the budget."""
    def bytes_for(tc):
        return (2 * cin_pad * HW * 2            # x (bf16, double-buffered)
                + 2 * 16 * tc * cin_pad * 2     # weights (bf16, double-buffered)
                + 2 * 8 * HW * 4                # boundary masks (f32)
                + 2 * 4 * tc * HW * 2           # conv output (bf16, double-buffered)
                + 4 * tc * HW * 4               # per-parity GEMM result (f32)
                + 2 * tc * HW * 4)              # acc / rolled temporaries (f32)
    if bytes_for(Cout) <= budget:
        return Cout
    best = None
    for tc in range(8, Cout, 8):
        if Cout % tc == 0 and bytes_for(tc) <= budget:
            best = tc
    return best if best is not None else Cout


def _pick_channel_tile(Cout, Cskip, lanes, budget):
    """Largest common channel tile of Cout/Cskip under a VMEM budget (prefer %8)."""
    g = math.gcd(Cout, Cskip)
    best_any, best_8 = 1, None
    for t in range(1, g + 1):
        if g % t:
            continue
        if t * lanes * (2 * 2 + 2 * 4 + 2 * 4) > budget:   # conv bf16 + skip/out f32
            continue
        best_any = t
        if t % 8 == 0:
            best_8 = t
    return best_8 if best_8 is not None else best_any


def upsample_forward(x, skip, weight, gamma, beta, *, eps=1e-5,
                     compute_dtype=jnp.bfloat16):
    """x: (N, Cin, H, W); skip: (N, Cskip, 2H, 2W); weight: (Cin, Cout, 4, 4)."""
    N, Cin, H, W = x.shape
    Cout = weight.shape[1]
    Cskip = skip.shape[1]
    HW = H * W
    assert skip.shape[2:] == (2 * H, 2 * W)

    vmem_limit, vmem_budget = _vmem_params()
    cin_pad = -(-Cin // 16) * 16                            # bf16 sublane packing
    tc = _pick_cout_tile(Cout, cin_pad, HW, vmem_budget)    # Cout tile (VMEM bound)
    n_ct = Cout // tc

    # ---- pack inputs for kernel A (no im2col / patch replication) --------------
    x3 = x.reshape(N, Cin, HW)
    if cin_pad != Cin:
        x3 = jnp.pad(x3, ((0, 0), (0, cin_pad - Cin), (0, 0)))
    x3 = x3.astype(compute_dtype)

    wt = jnp.transpose(weight, (2, 3, 1, 0))                # (ky, kx, Cout, Cin)
    w16 = jnp.stack([wt[ky, kx]
                     for taps in _PARITY_TAPS for (ky, kx, _, _) in taps], axis=0)
    w16 = (w16.reshape(16, n_ct, tc, Cin)
               .transpose(1, 0, 2, 3)
               .reshape(n_ct * 16 * tc, Cin))               # rows: (ct, parity, tap, ch)
    if cin_pad != Cin:
        w16 = jnp.pad(w16, ((0, 0), (0, cin_pad - Cin)))
    wmat = w16.astype(compute_dtype)

    masks = jnp.asarray(_boundary_masks(H, W))              # (8, 1, HW) f32

    # ---- kernel A: ReLU + conv-transpose + overlap-add + BN partial stats ------
    conv_par, sums, sqs = pl.pallas_call(
        _make_convt_kernel(W, tc, HW),
        out_shape=(jax.ShapeDtypeStruct((N, 4 * Cout, HW), compute_dtype),
                   jax.ShapeDtypeStruct((N, Cout, 1), jnp.float32),
                   jax.ShapeDtypeStruct((N, Cout, 1), jnp.float32)),
        grid_spec=pltpu.PrefetchScalarGridSpec(
            num_scalar_prefetch=0,
            grid=(N, n_ct),
            in_specs=[
                pl.BlockSpec((1, cin_pad, HW), lambda n, ct: (n, 0, 0)),
                pl.BlockSpec((16 * tc, cin_pad), lambda n, ct: (ct, 0)),
                pl.BlockSpec((8, 1, HW), lambda n, ct: (0, 0, 0)),
            ],
            out_specs=(
                pl.BlockSpec((1, 4 * tc, HW), lambda n, ct: (n, ct, 0)),
                pl.BlockSpec((1, tc, 1), lambda n, ct: (n, ct, 0)),
                pl.BlockSpec((1, tc, 1), lambda n, ct: (n, ct, 0)),
            )),
        compiler_params=pltpu.CompilerParams(
            dimension_semantics=("parallel", "parallel"),
            vmem_limit_bytes=vmem_limit),
    )(x3, wmat, masks)

    # ---- finalize BatchNorm statistics (tiny, O(Cout)) -------------------------
    cnt = jnp.float32(N * 4 * HW)                           # = N * 2H * 2W
    mean = jnp.sum(sums[:, :, 0], axis=0) / cnt
    # E[y^2]-mean^2 in f32 (clamped).  TODO(synk): centered two-pass variance if
    # activations are poorly scaled.
    var = jnp.maximum(jnp.sum(sqs[:, :, 0], axis=0) / cnt - mean * mean, 0.0)
    inv_std = jax.lax.rsqrt(var + eps)
    scale = gamma.astype(jnp.float32) * inv_std
    shift = beta.astype(jnp.float32) - mean * scale

    # ---- glue: one bf16 parity-interleave transpose to NCHW --------------------
    # TODO(synk): fold this interleave into kernel B (strided store / lane+sublane
    # interleave); kept as a single bf16 XLA pass for Mosaic-lowering safety.
    conv_nchw = jnp.transpose(
        conv_par.reshape(N, n_ct, 2, 2, tc, H, W),
        (0, 1, 4, 5, 2, 6, 3)).reshape(N, Cout, 4 * HW)     # (N, Cout, 2H*2W) bf16

    skip_flat = skip.reshape(N, Cskip, 4 * HW)
    out_dtype = skip.dtype
    tcb = _pick_channel_tile(Cout, Cskip, 4 * HW, vmem_budget)
    n_y = Cout // tcb
    n_tiles = (Cout + Cskip) // tcb

    # ---- kernel B: BatchNorm normalize + fused concat(skip) --------------------
    out_flat = pl.pallas_call(
        _make_bn_concat_kernel(n_y),
        out_shape=jax.ShapeDtypeStruct((N, Cout + Cskip, 4 * HW), out_dtype),
        grid_spec=pltpu.PrefetchScalarGridSpec(
            num_scalar_prefetch=0,
            grid=(N, n_tiles),
            in_specs=[
                pl.BlockSpec((1, tcb, 4 * HW),
                             lambda n, j: (n, jnp.minimum(j, n_y - 1), 0)),
                pl.BlockSpec((tcb, 1),
                             lambda n, j: (jnp.minimum(j, n_y - 1), 0)),
                pl.BlockSpec((tcb, 1),
                             lambda n, j: (jnp.minimum(j, n_y - 1), 0)),
                pl.BlockSpec((1, tcb, 4 * HW),
                             lambda n, j: (n, jnp.maximum(j - n_y, 0), 0)),
            ],
            out_specs=pl.BlockSpec((1, tcb, 4 * HW), lambda n, j: (n, j, 0))),
        compiler_params=pltpu.CompilerParams(
            dimension_semantics=("parallel", "parallel"),
            vmem_limit_bytes=vmem_limit),
    )(conv_nchw, scale.reshape(Cout, 1), shift.reshape(Cout, 1), skip_flat)

    # TODO(synk): use_dropout=True (nn.Dropout p=0.5) branch not implemented;
    # the module default is use_dropout=False.
    return out_flat.reshape(N, Cout + Cskip, 2 * H, 2 * W)


# --------------------------- pure-JAX reference -----------------------------

def upsample_reference(x, skip, weight, gamma, beta, eps=1e-5):
    xr = jnp.maximum(x, 0.0)
    rhs = jnp.transpose(weight, (1, 0, 2, 3))[:, :, ::-1, ::-1]
    y = jax.lax.conv_general_dilated(
        xr, rhs, window_strides=(1, 1), padding=((2, 2), (2, 2)),
        lhs_dilation=(2, 2), dimension_numbers=('NCHW', 'OIHW', 'NCHW'),
        precision=jax.lax.Precision.HIGHEST)
    mean = jnp.mean(y, axis=(0, 2, 3), keepdims=True)
    var = jnp.var(y, axis=(0, 2, 3), keepdims=True)
    yn = (y - mean) / jnp.sqrt(var + eps)
    yn = yn * gamma.reshape(1, -1, 1, 1) + beta.reshape(1, -1, 1, 1)
    return jnp.concatenate([yn, skip], axis=1)


if __name__ == "__main__":
    key = jax.random.PRNGKey(0)
    k1, k2, k3 = jax.random.split(key, 3)

    N, Cin, Cout, H, W = 2, 4, 8, 16, 16
    x = jax.random.normal(k1, (N, Cin, H, W), jnp.float32)
    skip = jax.random.normal(k2, (N, Cout, 2 * H, 2 * W), jnp.float32)
    weight = jax.random.normal(k3, (Cin, Cout, 4, 4), jnp.float32) * 0.1
    gamma = jnp.linspace(0.5, 1.5, Cout).astype(jnp.float32)
    beta = jnp.linspace(-0.1, 0.1, Cout).astype(jnp.float32)

    out = jax.jit(upsample_forward)(x, skip, weight, gamma, beta)
    out = jax.block_until_ready(out)

    ref = upsample_reference(x, skip, weight, gamma, beta)
    assert out.shape == (N, 2 * Cout, 2 * H, 2 * W), out.shape
    # bf16 GEMM inputs + bf16 storage of the pre-BN activation are intentional
    # (inference precision); the reference runs f32 HIGHEST, hence the ~3e-2 band.
    np.testing.assert_allclose(np.asarray(out), np.asarray(ref), rtol=3e-2, atol=3e-2)

    print("KERNEL_OK")
</pallas_src>

<mosaic_0001>
module attributes {stable_mosaic.version = 11 : i64} {
  func.func @kernel(%arg0: i32, %arg1: i32, %arg2: memref<1x16x256xbf16, #tpu.memory_space<vmem>>, %arg3: memref<128x16xbf16, #tpu.memory_space<vmem>>, %arg4: memref<8x1x256xf32, #tpu.memory_space<vmem>>, %arg5: memref<1x32x256xbf16, #tpu.memory_space<vmem>>, %arg6: memref<1x8x1xf32, #tpu.memory_space<vmem>>, %arg7: memref<1x8x1xf32, #tpu.memory_space<vmem>>) attributes {dimension_semantics = [#tpu.dimension_semantics<parallel>, #tpu.dimension_semantics<parallel>], iteration_bounds = array<i64: 2, 1>, scalar_prefetch = 0 : i64, scratch_operands = 0 : i64, tpu.core_type = #tpu.core_type<tc>, window_params = [{transform_indices = @transform_0, window_bounds = array<i64: 1, 16, 256>}, {transform_indices = @transform_1, window_bounds = array<i64: 128, 16>}, {pipeline_mode = #tpu.pipeline_mode<synchronous>, transform_indices = @transform_2, window_bounds = array<i64: 8, 1, 256>}, {transform_indices = @transform_3, window_bounds = array<i64: 1, 32, 256>}, {transform_indices = @transform_4, window_bounds = array<i64: 1, 8, 1>}, {transform_indices = @transform_5, window_bounds = array<i64: 1, 8, 1>}]} {
    %c0 = arith.constant 0 : index
    %c0_0 = arith.constant 0 : index
    %c0_1 = arith.constant 0 : index
    %0 = vector.load %arg2[%c0, %c0_0, %c0_1] : memref<1x16x256xbf16, #tpu.memory_space<vmem>>, vector<1x16x256xbf16>
    %1 = vector.shape_cast %0 : vector<1x16x256xbf16> to vector<16x256xbf16>
    %cst = arith.constant 0.000000e+00 : bf16
    %2 = vector.broadcast %cst : bf16 to vector<16x256xbf16>
    %3 = arith.maximumf %1, %2 : vector<16x256xbf16>
    %cst_2 = arith.constant 0.000000e+00 : f32
    %4 = vector.broadcast %cst_2 : f32 to vector<8x1xf32>
    %cst_3 = arith.constant 0.000000e+00 : f32
    %5 = vector.broadcast %cst_3 : f32 to vector<8x1xf32>
    %c0_4 = arith.constant 0 : index
    %c0_5 = arith.constant 0 : index
    %6 = vector.load %arg3[%c0_4, %c0_5] : memref<128x16xbf16, #tpu.memory_space<vmem>>, vector<32x16xbf16>
    %cst_6 = arith.constant dense<0.000000e+00> : vector<32x256xf32>
    %7 = tpu.matmul %6, %3, %cst_6 {dimension_numbers = #tpu.dot_dimension_numbers<[1], [0], [0], [1], [0, 0, 1, 1], [], []>} : vector<32x16xbf16>, vector<16x256xbf16>, vector<32x256xf32> -> vector<32x256xf32>
    %cst_7 = arith.constant 0.000000e+00 : f32
    %8 = vector.broadcast %cst_7 : f32 to vector<8x256xf32>
    %9 = vector.extract_strided_slice %7 {offsets = [0, 0], sizes = [8, 256], strides = [1, 1]} : vector<32x256xf32> to vector<8x256xf32>
    %10 = arith.addf %8, %9 : vector<8x256xf32>
    %11 = vector.extract_strided_slice %7 {offsets = [8, 0], sizes = [8, 256], strides = [1, 1]} : vector<32x256xf32> to vector<8x256xf32>
    %c1_i32 = arith.constant 1 : i32
    %12 = tpu.dynamic_rotate %11 by %c1_i32 dim 1 : vector<8x256xf32>, i32 -> vector<8x256xf32>
    %c3 = arith.constant 3 : index
    %c0_8 = arith.constant 0 : index
    %c0_9 = arith.constant 0 : index
    %13 = vector.load %arg4[%c3, %c0_8, %c0_9] : memref<8x1x256xf32, #tpu.memory_space<vmem>>, vector<1x1x256xf32>
    %14 = vector.shape_cast %13 : vector<1x1x256xf32> to vector<1x256xf32>
    %15 = vector.broadcast %14 : vector<1x256xf32> to vector<8x256xf32>
    %16 = arith.mulf %12, %15 : vector<8x256xf32>
    %17 = arith.addf %10, %16 : vector<8x256xf32>
    %18 = vector.extract_strided_slice %7 {offsets = [16, 0], sizes = [8, 256], strides = [1, 1]} : vector<32x256xf32> to vector<8x256xf32>
    %c16_i32 = arith.constant 16 : i32
    %19 = tpu.dynamic_rotate %18 by %c16_i32 dim 1 : vector<8x256xf32>, i32 -> vector<8x256xf32>
    %c1 = arith.constant 1 : index
    %c0_10 = arith.constant 0 : index
    %c0_11 = arith.constant 0 : index
    %20 = vector.load %arg4[%c1, %c0_10, %c0_11] : memref<8x1x256xf32, #tpu.memory_space<vmem>>, vector<1x1x256xf32>
    %21 = vector.shape_cast %20 : vector<1x1x256xf32> to vector<1x256xf32>
    %22 = vector.broadcast %21 : vector<1x256xf32> to vector<8x256xf32>
    %23 = arith.mulf %19, %22 : vector<8x256xf32>
    %24 = arith.addf %17, %23 : vector<8x256xf32>
    %25 = vector.extract_strided_slice %7 {offsets = [24, 0], sizes = [8, 256], strides = [1, 1]} : vector<32x256xf32> to vector<8x256xf32>
    %c17_i32 = arith.constant 17 : i32
    %26 = tpu.dynamic_rotate %25 by %c17_i32 dim 1 : vector<8x256xf32>, i32 -> vector<8x256xf32>
    %c0_12 = arith.constant 0 : index
    %c0_13 = arith.constant 0 : index
    %c0_14 = arith.constant 0 : index
    %27 = vector.load %arg4[%c0_12, %c0_13, %c0_14] : memref<8x1x256xf32, #tpu.memory_space<vmem>>, vector<1x1x256xf32>
    %28 = vector.shape_cast %27 : vector<1x1x256xf32> to vector<1x256xf32>
    %29 = vector.broadcast %28 : vector<1x256xf32> to vector<8x256xf32>
    %30 = arith.mulf %26, %29 : vector<8x256xf32>
    %31 = arith.addf %24, %30 : vector<8x256xf32>
    %32 = arith.truncf %31 : vector<8x256xf32> to vector<8x256xbf16>
    %c0_15 = arith.constant 0 : index
    %c0_16 = arith.constant 0 : index
    %c0_17 = arith.constant 0 : index
    %33 = vector.load %arg5[%c0_15, %c0_16, %c0_17] : memref<1x32x256xbf16, #tpu.memory_space<vmem>>, vector<1x8x256xbf16>
    %34 = vector.shape_cast %33 : vector<1x8x256xbf16> to vector<8x256xbf16>
    %35 = vector.shape_cast %32 : vector<8x256xbf16> to vector<1x8x256xbf16>
    tpu.vector_store %arg5[%c0_15, %c0_16, %c0_17], %35 {strides = array<i32>} : memref<1x32x256xbf16, #tpu.memory_space<vmem>>, vector<1x8x256xbf16>,
    %cst_18 = arith.constant dense<0.000000e+00> : vector<8xf32>
    %36 = vector.multi_reduction <add>, %31, %cst_18 [1] : vector<8x256xf32> to vector<8xf32>
    %37 = vector.shape_cast %36 : vector<8xf32> to vector<8x1xf32>
    %38 = arith.addf %4, %37 : vector<8x1xf32>
    %39 = arith.mulf %31, %31 : vector<8x256xf32>
    %cst_19 = arith.constant dense<0.000000e+00> : vector<8xf32>
    %40 = vector.multi_reduction <add>, %39, %cst_19 [1] : vector<8x256xf32> to vector<8xf32>
    %41 = vector.shape_cast %40 : vector<8xf32> to vector<8x1xf32>
    %42 = arith.addf %5, %41 : vector<8x1xf32>
    %c32 = arith.constant 32 : index
    %c0_20 = arith.constant 0 : index
    %43 = vector.load %arg3[%c32, %c0_20] : memref<128x16xbf16, #tpu.memory_space<vmem>>, vector<32x16xbf16>
    %cst_21 = arith.constant dense<0.000000e+00> : vector<32x256xf32>
    %44 = tpu.matmul %43, %3, %cst_21 {dimension_numbers = #tpu.dot_dimension_numbers<[1], [0], [0], [1], [0, 0, 1, 1], [], []>} : vector<32x16xbf16>, vector<16x256xbf16>, vector<32x256xf32> -> vector<32x256xf32>
    %cst_22 = arith.constant 0.000000e+00 : f32
    %45 = vector.broadcast %cst_22 : f32 to vector<8x256xf32>
    %46 = vector.extract_strided_slice %44 {offsets = [0, 0], sizes = [8, 256], strides = [1, 1]} : vector<32x256xf32> to vector<8x256xf32>
    %c255_i32 = arith.constant 255 : i32
    %47 = tpu.dynamic_rotate %46 by %c255_i32 dim 1 : vector<8x256xf32>, i32 -> vector<8x256xf32>
    %c4 = arith.constant 4 : index
    %c0_23 = arith.constant 0 : index
    %c0_24 = arith.constant 0 : index
    %48 = vector.load %arg4[%c4, %c0_23, %c0_24] : memref<8x1x256xf32, #tpu.memory_space<vmem>>, vector<1x1x256xf32>
    %49 = vector.shape_cast %48 : vector<1x1x256xf32> to vector<1x256xf32>
    %50 = vector.broadcast %49 : vector<1x256xf32> to vector<8x256xf32>
    %51 = arith.mulf %47, %50 : vector<8x256xf32>
    %52 = arith.addf %45, %51 : vector<8x256xf32>
    %53 = vector.extract_strided_slice %44 {offsets = [8, 0], sizes = [8, 256], strides = [1, 1]} : vector<32x256xf32> to vector<8x256xf32>
    %54 = arith.addf %52, %53 : vector<8x256xf32>
    %55 = vector.extract_strided_slice %44 {offsets = [16, 0], sizes = [8, 256], strides = [1, 1]} : vector<32x256xf32> to vector<8x256xf32>
    %c15_i32 = arith.constant 15 : i32
    %56 = tpu.dynamic_rotate %55 by %c15_i32 dim 1 : vector<8x256xf32>, i32 -> vector<8x256xf32>
    %c2 = arith.constant 2 : index
    %c0_25 = arith.constant 0 : index
    %c0_26 = arith.constant 0 : index
    %57 = vector.load %arg4[%c2, %c0_25, %c0_26] : memref<8x1x256xf32, #tpu.memory_space<vmem>>, vector<1x1x256xf32>
    %58 = vector.shape_cast %57 : vector<1x1x256xf32> to vector<1x256xf32>
    %59 = vector.broadcast %58 : vector<1x256xf32> to vector<8x256xf32>
    %60 = arith.mulf %56, %59 : vector<8x256xf32>
    %61 = arith.addf %54, %60 : vector<8x256xf32>
    %62 = vector.extract_strided_slice %44 {offsets = [24, 0], sizes = [8, 256], strides = [1, 1]} : vector<32x256xf32> to vector<8x256xf32>
    %c16_i32_27 = arith.constant 16 : i32
    %63 = tpu.dynamic_rotate %62 by %c16_i32_27 dim 1 : vector<8x256xf32>, i32 -> vector<8x256xf32>
    %c1_28 = arith.constant 1 : index
    %c0_29 = arith.constant 0 : index
    %c0_30 = arith.constant 0 : index
    %64 = vector.load %arg4[%c1_28, %c0_29, %c0_30] : memref<8x1x256xf32, #tpu.memory_space<vmem>>, vector<1x1x256xf32>
    %65 = vector.shape_cast %64 : vector<1x1x256xf32> to vector<1x256xf32>
    %66 = vector.broadcast %65 : vector<1x256xf32> to vector<8x256xf32>
    %67 = arith.mulf %63, %66 : vector<8x256xf32>
    %68 = arith.addf %61, %67 : vector<8x256xf32>
    %69 = arith.truncf %68 : vector<8x256xf32> to vector<8x256xbf16>
    %c0_31 = arith.constant 0 : index
    %c8 = arith.constant 8 : index
    %c0_32 = arith.constant 0 : index
    %70 = vector.load %arg5[%c0_31, %c8, %c0_32] : memref<1x32x256xbf16, #tpu.memory_space<vmem>>, vector<1x8x256xbf16>
    %71 = vector.shape_cast %70 : vector<1x8x256xbf16> to vector<8x256xbf16>
    %72 = vector.shape_cast %69 : vector<8x256xbf16> to vector<1x8x256xbf16>
    tpu.vector_store %arg5[%c0_31, %c8, %c0_32], %72 {strides = array<i32>} : memref<1x32x256xbf16, #tpu.memory_space<vmem>>, vector<1x8x256xbf16>,
    %cst_33 = arith.constant dense<0.000000e+00> : vector<8xf32>
    %73 = vector.multi_reduction <add>, %68, %cst_33 [1] : vector<8x256xf32> to vector<8xf32>
    %74 = vector.shape_cast %73 : vector<8xf32> to vector<8x1xf32>
    %75 = arith.addf %38, %74 : vector<8x1xf32>
    %76 = arith.mulf %68, %68 : vector<8x256xf32>
    %cst_34 = arith.constant dense<0.000000e+00> : vector<8xf32>
    %77 = vector.multi_reduction <add>, %76, %cst_34 [1] : vector<8x256xf32> to vector<8xf32>
    %78 = vector.shape_cast %77 : vector<8xf32> to vector<8x1xf32>
    %79 = arith.addf %42, %78 : vector<8x1xf32>
    %c64 = arith.constant 64 : index
    %c0_35 = arith.constant 0 : index
    %80 = vector.load %arg3[%c64, %c0_35] : memref<128x16xbf16, #tpu.memory_space<vmem>>, vector<32x16xbf16>
    %cst_36 = arith.constant dense<0.000000e+00> : vector<32x256xf32>
    %81 = tpu.matmul %80, %3, %cst_36 {dimension_numbers = #tpu.dot_dimension_numbers<[1], [0], [0], [1], [0, 0, 1, 1], [], []>} : vector<32x16xbf16>, vector<16x256xbf16>, vector<32x256xf32> -> vector<32x256xf32>
    %cst_37 = arith.constant 0.000000e+00 : f32
    %82 = vector.broadcast %cst_37 : f32 to vector<8x256xf32>
    %83 = vector.extract_strided_slice %81 {offsets = [0, 0], sizes = [8, 256], strides = [1, 1]} : vector<32x256xf32> to vector<8x256xf32>
    %c240_i32 = arith.constant 240 : i32
    %84 = tpu.dynamic_rotate %83 by %c240_i32 dim 1 : vector<8x256xf32>, i32 -> vector<8x256xf32>
    %c6 = arith.constant 6 : index
    %c0_38 = arith.constant 0 : index
    %c0_39 = arith.constant 0 : index
    %85 = vector.load %arg4[%c6, %c0_38, %c0_39] : memref<8x1x256xf32, #tpu.memory_space<vmem>>, vector<1x1x256xf32>
    %86 = vector.shape_cast %85 : vector<1x1x256xf32> to vector<1x256xf32>
    %87 = vector.broadcast %86 : vector<1x256xf32> to vector<8x256xf32>
    %88 = arith.mulf %84, %87 : vector<8x256xf32>
    %89 = arith.addf %82, %88 : vector<8x256xf32>
    %90 = vector.extract_strided_slice %81 {offsets = [8, 0], sizes = [8, 256], strides = [1, 1]} : vector<32x256xf32> to vector<8x256xf32>
    %c241_i32 = arith.constant 241 : i32
    %91 = tpu.dynamic_rotate %90 by %c241_i32 dim 1 : vector<8x256xf32>, i32 -> vector<8x256xf32>
    %c5 = arith.constant 5 : index
    %c0_40 = arith.constant 0 : index
    %c0_41 = arith.constant 0 : index
    %92 = vector.load %arg4[%c5, %c0_40, %c0_41] : memref<8x1x256xf32, #tpu.memory_space<vmem>>, vector<1x1x256xf32>
    %93 = vector.shape_cast %92 : vector<1x1x256xf32> to vector<1x256xf32>
    %94 = vector.broadcast %93 : vector<1x256xf32> to vector<8x256xf32>
    %95 = arith.mulf %91, %94 : vector<8x256xf32>
    %96 = arith.addf %89, %95 : vector<8x256xf32>
    %97 = vector.extract_strided_slice %81 {offsets = [16, 0], sizes = [8, 256], strides = [1, 1]} : vector<32x256xf32> to vector<8x256xf32>
    %98 = arith.addf %96, %97 : vector<8x256xf32>
    %99 = vector.extract_strided_slice %81 {offsets = [24, 0], sizes = [8, 256], strides = [1, 1]} : vector<32x256xf32> to vector<8x256xf32>
    %c1_i32_42 = arith.constant 1 : i32
    %100 = tpu.dynamic_rotate %99 by %c1_i32_42 dim 1 : vector<8x256xf32>, i32 -> vector<8x256xf32>
    %c3_43 = arith.constant 3 : index
    %c0_44 = arith.constant 0 : index
    %c0_45 = arith.constant 0 : index
    %101 = vector.load %arg4[%c3_43, %c0_44, %c0_45] : memref<8x1x256xf32, #tpu.memory_space<vmem>>, vector<1x1x256xf32>
    %102 = vector.shape_cast %101 : vector<1x1x256xf32> to vector<1x256xf32>
    %103 = vector.broadcast %102 : vector<1x256xf32> to vector<8x256xf32>
    %104 = arith.mulf %100, %103 : vector<8x256xf32>
    %105 = arith.addf %98, %104 : vector<8x256xf32>
    %106 = arith.truncf %105 : vector<8x256xf32> to vector<8x256xbf16>
    %c0_46 = arith.constant 0 : index
    %c16 = arith.constant 16 : index
    %c0_47 = arith.constant 0 : index
    %107 = vector.load %arg5[%c0_46, %c16, %c0_47] : memref<1x32x256xbf16, #tpu.memory_space<vmem>>, vector<1x8x256xbf16>
    %108 = vector.shape_cast %107 : vector<1x8x256xbf16> to vector<8x256xbf16>
    %109 = vector.shape_cast %106 : vector<8x256xbf16> to vector<1x8x256xbf16>
    tpu.vector_store %arg5[%c0_46, %c16, %c0_47], %109 {strides = array<i32>} : memref<1x32x256xbf16, #tpu.memory_space<vmem>>, vector<1x8x256xbf16>,
    %cst_48 = arith.constant dense<0.000000e+00> : vector<8xf32>
    %110 = vector.multi_reduction <add>, %105, %cst_48 [1] : vector<8x256xf32> to vector<8xf32>
    %111 = vector.shape_cast %110 : vector<8xf32> to vector<8x1xf32>
    %112 = arith.addf %75, %111 : vector<8x1xf32>
    %113 = arith.mulf %105, %105 : vector<8x256xf32>
    %cst_49 = arith.constant dense<0.000000e+00> : vector<8xf32>
    %114 = vector.multi_reduction <add>, %113, %cst_49 [1] : vector<8x256xf32> to vector<8xf32>
    %115 = vector.shape_cast %114 : vector<8xf32> to vector<8x1xf32>
    %116 = arith.addf %79, %115 : vector<8x1xf32>
    %c96 = arith.constant 96 : index
    %c0_50 = arith.constant 0 : index
    %117 = vector.load %arg3[%c96, %c0_50] : memref<128x16xbf16, #tpu.memory_space<vmem>>, vector<32x16xbf16>
    %cst_51 = arith.constant dense<0.000000e+00> : vector<32x256xf32>
    %118 = tpu.matmul %117, %3, %cst_51 {dimension_numbers = #tpu.dot_dimension_numbers<[1], [0], [0], [1], [0, 0, 1, 1], [], []>} : vector<32x16xbf16>, vector<16x256xbf16>, vector<32x256xf32> -> vector<32x256xf32>
    %cst_52 = arith.constant 0.000000e+00 : f32
    %119 = vector.broadcast %cst_52 : f32 to vector<8x256xf32>
    %120 = vector.extract_strided_slice %118 {offsets = [0, 0], sizes = [8, 256], strides = [1, 1]} : vector<32x256xf32> to vector<8x256xf32>
    %c239_i32 = arith.constant 239 : i32
    %121 = tpu.dynamic_rotate %120 by %c239_i32 dim 1 : vector<8x256xf32>, i32 -> vector<8x256xf32>
    %c7 = arith.constant 7 : index
    %c0_53 = arith.constant 0 : index
    %c0_54 = arith.constant 0 : index
    %122 = vector.load %arg4[%c7, %c0_53, %c0_54] : memref<8x1x256xf32, #tpu.memory_space<vmem>>, vector<1x1x256xf32>
    %123 = vector.shape_cast %122 : vector<1x1x256xf32> to vector<1x256xf32>
    %124 = vector.broadcast %123 : vector<1x256xf32> to vector<8x256xf32>
    %125 = arith.mulf %121, %124 : vector<8x256xf32>
    %126 = arith.addf %119, %125 : vector<8x256xf32>
    %127 = vector.extract_strided_slice %118 {offsets = [8, 0], sizes = [8, 256], strides = [1, 1]} : vector<32x256xf32> to vector<8x256xf32>
    %c240_i32_55 = arith.constant 240 : i32
    %128 = tpu.dynamic_rotate %127 by %c240_i32_55 dim 1 : vector<8x256xf32>, i32 -> vector<8x256xf32>
    %c6_56 = arith.constant 6 : index
    %c0_57 = arith.constant 0 : index
    %c0_58 = arith.constant 0 : index
    %129 = vector.load %arg4[%c6_56, %c0_57, %c0_58] : memref<8x1x256xf32, #tpu.memory_space<vmem>>, vector<1x1x256xf32>
    %130 = vector.shape_cast %129 : vector<1x1x256xf32> to vector<1x256xf32>
    %131 = vector.broadcast %130 : vector<1x256xf32> to vector<8x256xf32>
    %132 = arith.mulf %128, %131 : vector<8x256xf32>
    %133 = arith.addf %126, %132 : vector<8x256xf32>
    %134 = vector.extract_strided_slice %118 {offsets = [16, 0], sizes = [8, 256], strides = [1, 1]} : vector<32x256xf32> to vector<8x256xf32>
    %c255_i32_59 = arith.constant 255 : i32
    %135 = tpu.dynamic_rotate %134 by %c255_i32_59 dim 1 : vector<8x256xf32>, i32 -> vector<8x256xf32>
    %c4_60 = arith.constant 4 : index
    %c0_61 = arith.constant 0 : index
    %c0_62 = arith.constant 0 : index
    %136 = vector.load %arg4[%c4_60, %c0_61, %c0_62] : memref<8x1x256xf32, #tpu.memory_space<vmem>>, vector<1x1x256xf32>
    %137 = vector.shape_cast %136 : vector<1x1x256xf32> to vector<1x256xf32>
    %138 = vector.broadcast %137 : vector<1x256xf32> to vector<8x256xf32>
    %139 = arith.mulf %135, %138 : vector<8x256xf32>
    %140 = arith.addf %133, %139 : vector<8x256xf32>
    %141 = vector.extract_strided_slice %118 {offsets = [24, 0], sizes = [8, 256], strides = [1, 1]} : vector<32x256xf32> to vector<8x256xf32>
    %142 = arith.addf %140, %141 : vector<8x256xf32>
    %143 = arith.truncf %142 : vector<8x256xf32> to vector<8x256xbf16>
    %c0_63 = arith.constant 0 : index
    %c24 = arith.constant 24 : index
    %c0_64 = arith.constant 0 : index
    %144 = vector.load %arg5[%c0_63, %c24, %c0_64] : memref<1x32x256xbf16, #tpu.memory_space<vmem>>, vector<1x8x256xbf16>
    %145 = vector.shape_cast %144 : vector<1x8x256xbf16> to vector<8x256xbf16>
    %146 = vector.shape_cast %143 : vector<8x256xbf16> to vector<1x8x256xbf16>
    tpu.vector_store %arg5[%c0_63, %c24, %c0_64], %146 {strides = array<i32>} : memref<1x32x256xbf16, #tpu.memory_space<vmem>>, vector<1x8x256xbf16>,
    %cst_65 = arith.constant dense<0.000000e+00> : vector<8xf32>
    %147 = vector.multi_reduction <add>, %142, %cst_65 [1] : vector<8x256xf32> to vector<8xf32>
    %148 = vector.shape_cast %147 : vector<8xf32> to vector<8x1xf32>
    %149 = arith.addf %112, %148 : vector<8x1xf32>
    %150 = arith.mulf %142, %142 : vector<8x256xf32>
    %cst_66 = arith.constant dense<0.000000e+00> : vector<8xf32>
    %151 = vector.multi_reduction <add>, %150, %cst_66 [1] : vector<8x256xf32> to vector<8xf32>
    %152 = vector.shape_cast %151 : vector<8xf32> to vector<8x1xf32>
    %153 = arith.addf %116, %152 : vector<8x1xf32>
    %c0_67 = arith.constant 0 : index
    %c0_68 = arith.constant 0 : index
    %c0_69 = arith.constant 0 : index
    %154 = vector.load %arg6[%c0_67, %c0_68, %c0_69] : memref<1x8x1xf32, #tpu.memory_space<vmem>>, vector<1x8x1xf32>
    %155 = vector.shape_cast %154 : vector<1x8x1xf32> to vector<8x1xf32>
    %156 = vector.shape_cast %149 : vector<8x1xf32> to vector<1x8x1xf32>
    tpu.vector_store %arg6[%c0_67, %c0_68, %c0_69], %156 {strides = array<i32>} : memref<1x8x1xf32, #tpu.memory_space<vmem>>, vector<1x8x1xf32>,
    %c0_70 = arith.constant 0 : index
    %c0_71 = arith.constant 0 : index
    %c0_72 = arith.constant 0 : index
    %157 = vector.load %arg7[%c0_70, %c0_71, %c0_72] : memref<1x8x1xf32, #tpu.memory_space<vmem>>, vector<1x8x1xf32>
    %158 = vector.shape_cast %157 : vector<1x8x1xf32> to vector<8x1xf32>
    %159 = vector.shape_cast %153 : vector<8x1xf32> to vector<1x8x1xf32>
    tpu.vector_store %arg7[%c0_70, %c0_71, %c0_72], %159 {strides = array<i32>} : memref<1x8x1xf32, #tpu.memory_space<vmem>>, vector<1x8x1xf32>,
    return
  }
  func.func @transform_0(%arg0: i32, %arg1: i32) -> (i32, i32, i32) {
    %c0_i32 = arith.constant 0 : i32
    %c0_i32_0 = arith.constant 0 : i32
    %c0_i32_1 = arith.constant 0 : i32
    return %arg0, %c0_i32, %c0_i32_0 : i32, i32, i32
  }
  func.func @transform_1(%arg0: i32, %arg1: i32) -> (i32, i32) {
    %c0_i32 = arith.constant 0 : i32
    %c0_i32_0 = arith.constant 0 : i32
    return %arg1, %c0_i32 : i32, i32
  }
  func.func @transform_2(%arg0: i32, %arg1: i32) -> (i32, i32, i32) {
    %c0_i32 = arith.constant 0 : i32
    %c0_i32_0 = arith.constant 0 : i32
    %c0_i32_1 = arith.constant 0 : i32
    %c0_i32_2 = arith.constant 0 : i32
    return %c0_i32, %c0_i32_0, %c0_i32_1 : i32, i32, i32
  }
  func.func @transform_3(%arg0: i32, %arg1: i32) -> (i32, i32, i32) {
    %c0_i32 = arith.constant 0 : i32
    %c0_i32_0 = arith.constant 0 : i32
    return %arg0, %arg1, %c0_i32 : i32, i32, i32
  }
  func.func @transform_4(%arg0: i32, %arg1: i32) -> (i32, i32, i32) {
    %c0_i32 = arith.constant 0 : i32
    %c0_i32_0 = arith.constant 0 : i32
    return %arg0, %arg1, %c0_i32 : i32, i32, i32
  }
  func.func @transform_5(%arg0: i32, %arg1: i32) -> (i32, i32, i32) {
    %c0_i32 = arith.constant 0 : i32
    %c0_i32_0 = arith.constant 0 : i32
    return %arg0, %arg1, %c0_i32 : i32, i32, i32
  }
}

module attributes {stable_mosaic.version = 11 : i64} {
  func.func @kernel(%arg0: i32, %arg1: i32, %arg2: memref<1x8x1024xbf16, #tpu.memory_space<vmem>>, %arg3: memref<8x1xf32, #tpu.memory_space<vmem>>, %arg4: memref<8x1xf32, #tpu.memory_space<vmem>>, %arg5: memref<1x8x1024xf32, #tpu.memory_space<vmem>>, %arg6: memref<1x8x1024xf32, #tpu.memory_space<vmem>>) attributes {dimension_semantics = [#tpu.dimension_semantics<parallel>, #tpu.dimension_semantics<parallel>], iteration_bounds = array<i64: 2, 2>, scalar_prefetch = 0 : i64, scratch_operands = 0 : i64, tpu.core_type = #tpu.core_type<tc>, window_params = [{transform_indices = @transform_0, window_bounds = array<i64: 1, 8, 1024>}, {transform_indices = @transform_1, window_bounds = array<i64: 8, 1>}, {transform_indices = @transform_2, window_bounds = array<i64: 8, 1>}, {transform_indices = @transform_3, window_bounds = array<i64: 1, 8, 1024>}, {transform_indices = @transform_4, window_bounds = array<i64: 1, 8, 1024>}]} {
    %c1_i32 = arith.constant 1 : i32
    %0 = arith.cmpi slt, %arg1, %c1_i32 : i32
    %1 = arith.extui %0 : i1 to i32
    %c0_i32 = arith.constant 0 : i32
    %2 = arith.cmpi ne, %1, %c0_i32 : i32
    scf.if %2 {
      %c0 = arith.constant 0 : index
      %c0_2 = arith.constant 0 : index
      %c0_3 = arith.constant 0 : index
      %6 = vector.load %arg2[%c0, %c0_2, %c0_3] : memref<1x8x1024xbf16, #tpu.memory_space<vmem>>, vector<1x8x1024xbf16>
      %7 = vector.shape_cast %6 : vector<1x8x1024xbf16> to vector<8x1024xbf16>
      %8 = arith.extf %7 : vector<8x1024xbf16> to vector<8x1024xf32>
      %c0_4 = arith.constant 0 : index
      %c0_5 = arith.constant 0 : index
      %9 = vector.load %arg3[%c0_4, %c0_5] : memref<8x1xf32, #tpu.memory_space<vmem>>, vector<8x1xf32>
      %10 = vector.broadcast %9 : vector<8x1xf32> to vector<8x1024xf32>
      %11 = arith.mulf %8, %10 : vector<8x1024xf32>
      %c0_6 = arith.constant 0 : index
      %c0_7 = arith.constant 0 : index
      %12 = vector.load %arg4[%c0_6, %c0_7] : memref<8x1xf32, #tpu.memory_space<vmem>>, vector<8x1xf32>
      %13 = vector.broadcast %12 : vector<8x1xf32> to vector<8x1024xf32>
      %14 = arith.addf %11, %13 : vector<8x1024xf32>
      %c0_8 = arith.constant 0 : index
      %c0_9 = arith.constant 0 : index
      %c0_10 = arith.constant 0 : index
      %15 = vector.load %arg6[%c0_8, %c0_9, %c0_10] : memref<1x8x1024xf32, #tpu.memory_space<vmem>>, vector<1x8x1024xf32>
      %16 = vector.shape_cast %15 : vector<1x8x1024xf32> to vector<8x1024xf32>
      %17 = vector.shape_cast %14 : vector<8x1024xf32> to vector<1x8x1024xf32>
      tpu.vector_store %arg6[%c0_8, %c0_9, %c0_10], %17 {strides = array<i32>} : memref<1x8x1024xf32, #tpu.memory_space<vmem>>, vector<1x8x1024xf32>,
    } else {
    }
    %c1_i32_0 = arith.constant 1 : i32
    %3 = arith.cmpi sge, %arg1, %c1_i32_0 : i32
    %4 = arith.extui %3 : i1 to i32
    %c0_i32_1 = arith.constant 0 : i32
    %5 = arith.cmpi ne, %4, %c0_i32_1 : i32
    scf.if %5 {
      %c0 = arith.constant 0 : index
      %c0_2 = arith.constant 0 : index
      %c0_3 = arith.constant 0 : index
      %6 = vector.load %arg5[%c0, %c0_2, %c0_3] : memref<1x8x1024xf32, #tpu.memory_space<vmem>>, vector<1x8x1024xf32>
      %7 = vector.shape_cast %6 : vector<1x8x1024xf32> to vector<8x1024xf32>
      %c0_4 = arith.constant 0 : index
      %c0_5 = arith.constant 0 : index
      %c0_6 = arith.constant 0 : index
      %8 = vector.load %arg6[%c0_4, %c0_5, %c0_6] : memref<1x8x1024xf32, #tpu.memory_space<vmem>>, vector<1x8x1024xf32>
      %9 = vector.shape_cast %8 : vector<1x8x1024xf32> to vector<8x1024xf32>
      %10 = vector.shape_cast %7 : vector<8x1024xf32> to vector<1x8x1024xf32>
      tpu.vector_store %arg6[%c0_4, %c0_5, %c0_6], %10 {strides = array<i32>} : memref<1x8x1024xf32, #tpu.memory_space<vmem>>, vector<1x8x1024xf32>,
    } else {
    }
    return
  }
  func.func @transform_0(%arg0: i32, %arg1: i32) -> (i32, i32, i32) {
    %c0_i32 = arith.constant 0 : i32
    %0 = arith.minsi %arg1, %c0_i32 : i32
    %c0_i32_0 = arith.constant 0 : i32
    %c0_i32_1 = arith.constant 0 : i32
    return %arg0, %0, %c0_i32_0 : i32, i32, i32
  }
  func.func @transform_1(%arg0: i32, %arg1: i32) -> (i32, i32) {
    %c0_i32 = arith.constant 0 : i32
    %0 = arith.minsi %arg1, %c0_i32 : i32
    %c0_i32_0 = arith.constant 0 : i32
    %c0_i32_1 = arith.constant 0 : i32
    return %0, %c0_i32_0 : i32, i32
  }
  func.func @transform_2(%arg0: i32, %arg1: i32) -> (i32, i32) {
    %c0_i32 = arith.constant 0 : i32
    %0 = arith.minsi %arg1, %c0_i32 : i32
    %c0_i32_0 = arith.constant 0 : i32
    %c0_i32_1 = arith.constant 0 : i32
    return %0, %c0_i32_0 : i32, i32
  }
  func.func @transform_3(%arg0: i32, %arg1: i32) -> (i32, i32, i32) {
    %c1_i32 = arith.constant 1 : i32
    %0 = arith.subi %arg1, %c1_i32 : i32
    %c0_i32 = arith.constant 0 : i32
    %1 = arith.maxsi %0, %c0_i32 : i32
    %c0_i32_0 = arith.constant 0 : i32
    %c0_i32_1 = arith.constant 0 : i32
    return %arg0, %1, %c0_i32_0 : i32, i32, i32
  }
  func.func @transform_4(%arg0: i32, %arg1: i32) -> (i32, i32, i32) {
    %c0_i32 = arith.constant 0 : i32
    %c0_i32_0 = arith.constant 0 : i32
    return %arg0, %arg1, %c0_i32 : i32, i32, i32
  }
}

</mosaic_0001>

<bundles_post_ra>
// kernel: upsample_forward.2
= control target key start
LH: loop header
LB: loop body
LE: loop exit
PB: predicated region body
PF: predicated region fallthrough
CT: control target
= control target key end

     0   :  { %s1184_s18 = smov 0   ;;  %s1186_s19 = smov 0   ;;  %s1386_s0 = inlined_call_operand.vmem [shape: bf16[2,16,256], index: 0, kind: input, shape index: {}]   ;;  %s1387_s1 = inlined_call_operand.vmem [shape: bf16[128,16], index: 1, kind: input, shape index: {}]   ;;  %s1388_s2 = inlined_call_operand.vmem [shape: f32[8,1,256], index: 2, kind: input, shape index: {}]   ;;  %s1389_s3 = inlined_call_operand.vmem [shape: bf16[2,32,256], index: 3, kind: output, shape index: {0}]   ;;  %s1390_s4 = inlined_call_operand.vmem [shape: f32[2,8,1], index: 4, kind: output, shape index: {1}]   ;;  %s1391_s5 = inlined_call_operand.vmem [shape: f32[2,8,1], index: 5, kind: output, shape index: {2}]  }
   0x1   :  { %s1188_s20 = smov 0  }
   0x2 LB: > { %s28_s21 = sadd.s32 1, %s1140_s19  ;;  %p1012_p0 = scmp.ge.s32.totalorder %s1144_s20, 1  ;;  %s1144_s20 = sphi %s1188_s20, %s16_s20   ;;  %s1140_s19 = sphi %s1186_s19, %s1393_s19   ;;  %s1136_s18 = sphi %s1184_s18, %s1392_s18  }
   0x3   : > { %p30_p1 = scmp.ge.s32.totalorder %s28_s21, 2  ;;  %p221_p2 = scmp.lt.s32.totalorder %s1144_s20, 3 }
   0x5   : > { %s1395_s21 = smov (%p30_p1, %s28_s21), 0  ;;  %p222_p3 = pnand %p1012_p0, %p221_p2 }
   0x6   : > { %p273_p4 = scmp.lt.s32.totalorder (!%p222_p3), %s1136_s18, 1  ;;  %s1146_s17 = smov (!%p222_p3), 127  }
   0x7   : > { %225 = sbr.rel (%p222_p3) target bundleno = 474 (0x1da), region = 32  ;;  %s1148_s23 = smov (!%p222_p3), 16  }
   0x8   : > { %s1149_s24 = smov (!%p222_p3), 15   ;;  %s1151_s26 = smov (!%p222_p3), 17  }
   0x9   : > { %s1152_s27 = smov (!%p222_p3), 111   ;;  %s1153_s28 = smov (!%p222_p3), 113  }
   0xc   : > { %s1397_s18 = smov (!%p273_p4, %s1136_s18), 1  ;;  %v1082_v12 = vld [vmem:[%s1387_s1] sm:$0xff]  ;;  %v1084_v13 = vld [vmem:[%s1387_s1 + $0x10] sm:$0xff]  ;;  %vm336_vm0 = vcmask 130048   ;;  %v1083_v14 = vld [vmem:[%s1387_s1 + $0x8] sm:$0xff]  ;;  %v387_v55 = vlaneseq  ;;  %vm820_vm9 = vcmask 7168  }
   0xd   : > { %s1080_s22 = sshll.u32 %s1397_s18, 4  ;;  %v1085_v15 = vld [vmem:[%s1387_s1 + $0x18] sm:$0xff]  ;;  %v1086_v16 = vld [vmem:[%s1387_s1 + $0x20] sm:$0xff]  ;;  %v1088_v17 = vld [vmem:[%s1387_s1 + $0x30] sm:$0xff]  ;;  %s1081_s14 = sshll.u32 %s1397_s18, 5 }
   0xe   : > { %s277_s25 = scalar_lea.vmem %s1386_s0, %s1080_s22  ;;  %v1089_v18 = vld [vmem:[%s1387_s1 + $0x38] sm:$0xff]  ;;  %v1087_v19 = vld [vmem:[%s1387_s1 + $0x28] sm:$0xff]  ;;  %s1147_s22 = smov 1   ;;  %v1272_v56 = vand.u32 127, %v387_v55  ;;  %v1031_v58 = vld [vmem:[%s1388_s2 + $0x6] sm:$0x3] }
   0xf   : > { %v310_v0 = vld [vmem:[%s277_s25] sm:$0xff]  ;;  %v311_v1 = vld [vmem:[%s277_s25 + $0x8] sm:$0xff]  ;;  %s1150_s25 = smov 112   ;;  %v395_v61 = vperm.slane %v1031_v58, 0  ;;  %v396_v62 = vperm.slane %v1031_v58, 1  ;;  %s1017_s11 = sshll.u32 %s1397_s18, 3 }
  0x10   : > { %v312_v2 = vunpack.c.l.bf16 %v310_v0  ;;  %v314_v3 = vunpack.c.l.bf16 %v311_v1  ;;  %v313_v4 = vunpack.c.h.bf16 %v310_v0  ;;  %v315_v5 = vunpack.c.h.bf16 %v311_v1  ;;  %v1032_v1 = vld [vmem:[%s1388_s2 + $0x2] sm:$0x3] }
  0x11   : > { %vm389_vm1 = vcmp.lt.s32.totalorder %v1272_v56, 1  ;;  %vm425_vm2 = vcmp.lt.s32.totalorder %v1272_v56, 17  ;;  %vm407_vm3 = vcmp.lt.s32.totalorder %v1272_v56, 16  ;;  %vm512_vm4 = vcmp.lt.s32.totalorder %v1272_v56, 127 }
  0x12   : > { %v316_v6 = vmax.f32 %v312_v2, 0.0  ;;  %v318_v7 = vmax.f32 %v314_v3, 0.0  ;;  %v317_v8 = vmax.f32 %v313_v4, 0.0  ;;  %v319_v9 = vmax.f32 %v315_v5, 0.0  ;;  %v428_v2 = vld [vmem:[%s1388_s2] sm:$0x3] }
  0x13   : > { %vm532_vm5 = vcmp.lt.s32.totalorder %v1272_v56, 15  ;;  %vm654_vm6 = vcmp.lt.s32.totalorder %v1272_v56, 113  ;;  %vm636_vm7 = vcmp.lt.s32.totalorder %v1272_v56, 112  ;;  %vm760_vm8 = vcmp.lt.s32.totalorder %v1272_v56, 111 }
  0x14   : > { %v320_v10 = vpack.c.bf16 %v318_v7, %v316_v6  ;;  %v321_v11 = vpack.c.bf16 %v319_v9, %v317_v8  ;;  %v413_v6 = vperm.slane %v1032_v1, 0  ;;  %v414_v7 = vperm.slane %v1032_v1, 1 }
  0x15   : > { %v430_v8 = vperm.slane %v428_v2, 0  ;;  %v431_v9 = vperm.slane %v428_v2, 1 }
  0x16   : > { %350 = vmatpush.bf16.msra.mxu0 %v320_v10  ;;  %477 = vmatpush.bf16.msra.mxu2 %v320_v10 }
  0x17   : > { %496 = vmatpush.bf16.msra.mxu3 %v321_v11  ;;  %369 = vmatpush.bf16.msra.mxu1 %v321_v11 }
  0x19   : > { %1027 = vmatmul.msk.bf16.vlgmr.msra.gmra.mxu0 %vm336_vm0, %v1082_v12  ;;  %1041 = vmatmul.msk.bf16.vlgmr.msra.gmra.mxu2 %vm336_vm0, %v1084_v13 }
  0x1a   : > { %725 = vmatpush.bf16.msrb.mxu2 %v320_v10  ;;  %1043 = vmatmul.msk.bf16.vlgmr.msra.gmra.mxu3 %vm336_vm0, %v1084_v13 }
  0x1b   : > { %620 = vmatpush.bf16.msrb.mxu1 %v321_v11  ;;  %601 = vmatpush.bf16.msrb.mxu0 %v320_v10 }
  0x1c   : > { %1029 = vmatmul.msk.bf16.vlgmr.msra.gmra.mxu1 %vm336_vm0, %v1082_v12  ;;  %744 = vmatpush.bf16.msrb.mxu3 %v321_v11 }
  0x29   : > { %1028 = vmatmul.msk.bf16.gmra.mxu0 %vm336_vm0, %v1083_v14  ;;  %1042 = vmatmul.msk.bf16.gmra.mxu2 %vm336_vm0, %v1085_v15 }
  0x2a   : > { %1044 = vmatmul.msk.bf16.gmra.mxu3 %vm336_vm0, %v1085_v15  ;;  %v1045_v15 = vld [vmem:[%s1388_s2 + $0x8] sm:$0x3] }
  0x2c   : > { %1030 = vmatmul.msk.bf16.gmra.mxu1 %vm336_vm0, %v1083_v14 }
  0x39   : > { %1056 = vmatmul.msk.bf16.vlgmr.msrb.gmra.mxu0 %vm336_vm0, %v1086_v16  ;;  %1071 = vmatmul.msk.bf16.vlgmr.msrb.gmra.mxu2 %vm336_vm0, %v1088_v17 }
  0x3a   : > { %1073 = vmatmul.msk.bf16.vlgmr.msrb.gmra.mxu3 %vm336_vm0, %v1088_v17 }
  0x3c   : > { %1058 = vmatmul.msk.bf16.vlgmr.msrb.gmra.mxu1 %vm336_vm0, %v1086_v16 }
  0x49   : > { %1072 = vmatmul.msk.bf16.gmra.mxu2 %vm336_vm0, %v1089_v18  ;;  %1057 = vmatmul.msk.bf16.gmra.mxu0 %vm336_vm0, %v1087_v19 }
  0x4a   : > { %1074 = vmatmul.msk.bf16.gmra.mxu3 %vm336_vm0, %v1089_v18 }
  0x4c   : > { %1059 = vmatmul.msk.bf16.gmra.mxu1 %vm336_vm0, %v1087_v19 }
  0x96   : > { %v1248_v20 = vpop.f32.mrf.mxu0 }
  0x99   : > { %v1250_v21 = vpop.f32.mrf.mxu1 }
  0x9c   : > { %v479_v22 = vpop.f32.mrf.mxu2 }
  0x9d   : > { %v498_v23 = vpop.f32.mrf.mxu3  ;;  %508 = vrot.lane.b32.xlu2 %v479_v22, %s1146_s17  ;;  %v1046_v22 = vld [vmem:[%s1388_s2 + $0x4] sm:$0x3] }
  0x9e   : > { %v354_v24 = vpop.f32.mrf.mxu0 }
  0x9f   : > { %383 = vrot.lane.b32.xlu0 %v354_v24, %s1147_s22 }
  0xa1   : > { %v373_v25 = vpop.f32.mrf.mxu1 }
  0xa4   : > { %v1254_v26 = vpop.f32.mrf.mxu2 }
  0xa5   : > { %v1256_v27 = vpop.f32.mrf.mxu3  ;;  %510 = vrot.lane.b32.xlu2 %v498_v23, %s1146_s17 }
  0xa6   : > { %v357_v28 = vpop.f32.mrf.mxu0 }
  0xa7   : > { %385 = vrot.lane.b32.xlu0 %v373_v25, %s1147_s22  ;;  %403 = vrot.lane.b32.xlu1 %v357_v28, %s1148_s23 }
  0xa9   : > { %v376_v29 = vpop.f32.mrf.mxu1 }
  0xac   : > { %v484_v30 = vpop.f32.mrf.mxu2 }
  0xad   : > { %v503_v31 = vpop.f32.mrf.mxu3  ;;  %528 = vrot.lane.b32.xlu2 %v484_v30, %s1149_s24  ;;  %v519_v30 = vperm.slane %v1045_v15, 1 }
  0xae   : > { %v359_v32 = vpop.f32.mrf.mxu0 }
  0xaf   : > { %405 = vrot.lane.b32.xlu1 %v376_v29, %s1148_s23  ;;  %v518_v29 = vperm.slane %v1045_v15, 0 }
  0xb1   : > { %v378_v33 = vpop.f32.mrf.mxu1 }
  0xb4   : > { %v486_v34 = vpop.f32.mrf.mxu2 }
  0xb5   : > { %v505_v35 = vpop.f32.mrf.mxu3  ;;  %530 = vrot.lane.b32.xlu2 %v503_v31, %s1149_s24 }
  0xb6   : > { %v603_v36 = vpop.f32.mrf.mxu0 }
  0xb7   : > { %632 = vrot.lane.b32.xlu0 %v603_v36, %s1150_s25 }
  0xb9   : > { %v622_v37 = vpop.f32.mrf.mxu1 }
  0xba   : > { %634 = vrot.lane.b32.xlu1 %v622_v37, %s1150_s25 }
  0xbc   : > { %v727_v38 = vpop.f32.mrf.mxu2 }
  0xbd   : > { %421 = vrot.lane.b32.xlu2 %v359_v32, %s1151_s26  ;;  %v746_v39 = vpop.f32.mrf.mxu3 }
  0xbe   : > { %v605_v46 = vpop.f32.mrf.mxu0 }
  0xbf   : > { %756 = vrot.lane.b32.xlu0 %v727_v38, %s1152_s27 }
  0xc1   : > { %v624_v40 = vpop.f32.mrf.mxu1 }
  0xc4   : > { %v729_v41 = vpop.f32.mrf.mxu2 }
  0xc5   : > { %423 = vrot.lane.b32.xlu2 %v378_v33, %s1151_s26  ;;  %v748_v42 = vpop.f32.mrf.mxu3  ;;  %774 = vrot.lane.b32.xlu1 %v729_v41, %s1150_s25 }
  0xc6   : > { %v1268_v47 = vpop.f32.mrf.mxu0 }
  0xc7   : > { %776 = vrot.lane.b32.xlu0 %v748_v42, %s1150_s25  ;;  %v1047_v42 = vld [vmem:[%s1388_s2 + $0x2] sm:$0x3] }
  0xc9   : > { %v1262_v43 = vpop.f32.mrf.mxu1 }
  0xcc   : > { %v732_v44 = vpop.f32.mrf.mxu2 }
  0xcd   : > { %546 = vrot.lane.b32.xlu2 %v486_v34, %s1148_s23  ;;  %v751_v50 = vpop.f32.mrf.mxu3  ;;  %v538_v34 = vperm.slane %v1046_v22, 0 }
  0xce   : > { %v610_v48 = vpop.f32.mrf.mxu0 }
  0xcf   : > { %790 = vrot.lane.b32.xlu0 %v732_v44, %s1146_s17 }
  0xd1   : > { %v629_v45 = vpop.f32.mrf.mxu1 }
  0xd2   : > { %672 = vrot.lane.b32.xlu1 %v629_v45, %s1147_s22 }
  0xd5   : > { %548 = vrot.lane.b32.xlu2 %v505_v35, %s1148_s23  ;;  %v539_v35 = vperm.slane %v1046_v22, 1 }
  0xdd   : > { %758 = vrot.lane.b32.xlu2 %v746_v39, %s1152_s27 }
  0xe5   : > { %650 = vrot.lane.b32.xlu2 %v605_v46, %s1153_s28 }
  0xed   : > { %652 = vrot.lane.b32.xlu2 %v624_v40, %s1153_s28 }
  0xf5   : > { %670 = vrot.lane.b32.xlu2 %v610_v48, %s1147_s22 }
  0xf7   : > { %v509_v49 = vpop.permute.xlu2 %508 }
  0xfd   : > { %792 = vrot.lane.b32.xlu2 %v751_v50, %s1146_s17  ;;  %s1312_s17 = scalar_lea.vmem %s1389_s3, %s1081_s14  ;;  %v554_v50 = vperm.slane %v1047_v42, 0  ;;  %s301_s14 = scalar_lea.vmem %s1390_s4, %s1017_s11 }
  0xff   : > { %v511_v51 = vpop.permute.xlu2 %510 }
 0x100   : > { %v513_v32 = vsel %vm512_vm4, %v509_v49, %v511_v51  ;;  %v514_v33 = vsel %vm512_vm4, %v511_v51, %v509_v49  ;;  %v555_v51 = vperm.slane %v1047_v42, 1 }
 0x101   : > { %v522_v44 = vmul.f32 %v518_v29, %v513_v32  ;;  %v523_v45 = vmul.f32 %v519_v30, %v514_v33  ;;  %v1076_v29 = vld [vmem:[%s1388_s2 + $0xc] sm:$0x3]  ;;  %v1075_v33 = vld [vmem:[%s1388_s2 + $0xe] sm:$0x3] }
 0x103   : > { %v527_v55 = vadd.f32 %v523_v45, %v1256_v27 }
 0x107   : > { %v529_v52 = vpop.permute.xlu2 %528 }
 0x10f   : > { %v531_v53 = vpop.permute.xlu2 %530 }
 0x110   : > { %v533_v40 = vsel %vm532_vm5, %v529_v52, %v531_v53  ;;  %v534_v41 = vsel %vm532_vm5, %v531_v53, %v529_v52 }
 0x111   : > { %v384_v54 = vpop.permute.xlu0 %383  ;;  %v542_v48 = vmul.f32 %v538_v34, %v534_v41  ;;  %v543_v49 = vmul.f32 %v539_v35, %v533_v40  ;;  %v782_v34 = vperm.slane %v1076_v29, 0  ;;  %v783_v35 = vperm.slane %v1076_v29, 1 }
 0x117   : > { %v422_v57 = vpop.permute.xlu2 %421 }
 0x119   : > { %v386_v59 = vpop.permute.xlu0 %385  ;;  %v404_v60 = vpop.permute.xlu1 %403 }
 0x11a   : > { %v390_v63 = vsel %vm389_vm1, %v384_v54, %v386_v59  ;;  %v391_v0 = vsel %vm389_vm1, %v386_v59, %v384_v54  ;;  %v526_v54 = vadd.f32 %v522_v44, %v1254_v26  ;;  %v545_v59 = vadd.f32 %v543_v49, %v527_v55 }
 0x11b   : > { %v399_v3 = vmul.f32 %v395_v61, %v391_v0  ;;  %v400_v4 = vmul.f32 %v396_v62, %v390_v63  ;;  %v766_v49 = vperm.slane %v1075_v33, 0 }
 0x11c   : > { %v544_v58 = vadd.f32 %v542_v48, %v526_v54  ;;  %v1077_v48 = vld [vmem:[%s1388_s2 + $0x8] sm:$0x3] }
 0x11d   : > { %v401_v16 = vadd.f32 %v399_v3, %v1248_v20  ;;  %v402_v17 = vadd.f32 %v400_v4, %v1250_v21 }
 0x11f   : > { %v424_v5 = vpop.permute.xlu2 %423 }
 0x120   : > { %v426_v11 = vsel %vm425_vm2, %v422_v57, %v424_v5  ;;  %v427_v12 = vsel %vm425_vm2, %v424_v5, %v422_v57 }
 0x121   : > { %v406_v10 = vpop.permute.xlu1 %405  ;;  %v434_v23 = vmul.f32 %v430_v8, %v427_v12  ;;  %v435_v24 = vmul.f32 %v431_v9, %v426_v11  ;;  %v1060_v9 = vld [vmem:[%s1388_s2 + $0xc] sm:$0x3] }
 0x122   : > { %v408_v13 = vsel %vm407_vm3, %v404_v60, %v406_v10  ;;  %v409_v14 = vsel %vm407_vm3, %v406_v10, %v404_v60  ;;  %v642_v12 = vperm.slane %v1060_v9, 0 }
 0x123   : > { %v417_v18 = vmul.f32 %v413_v6, %v409_v14  ;;  %v418_v19 = vmul.f32 %v414_v7, %v408_v13  ;;  %v1061_v7 = vld [vmem:[%s1388_s2 + $0xa] sm:$0x3]  ;;  %v643_v13 = vperm.slane %v1060_v9, 1  ;;  %v734_v9 = vpop.f32.mrf.mxu2 }
 0x124   : > { %v660_v10 = vperm.slane %v1061_v7, 0  ;;  %v661_v11 = vperm.slane %v1061_v7, 1 }
 0x125   : > { %v419_v25 = vadd.f32 %v417_v18, %v401_v16  ;;  %v420_v28 = vadd.f32 %v418_v19, %v402_v17 }
 0x127   : > { %v547_v20 = vpop.permute.xlu2 %546  ;;  %v436_v31 = vadd.f32 %v434_v23, %v419_v25  ;;  %v437_v21 = vadd.f32 %v435_v24, %v420_v28  ;;  %v1062_v24 = vld [vmem:[%s1388_s2 + $0x6] sm:$0x3] }
 0x128   : > { %v679_v32 = vperm.slane %v1062_v24, 1 }
 0x129   : > { %v438_v36 = vpack.c.bf16 %v437_v21, %v436_v31  ;;  %v440_v37 = vadd.f32 %v437_v21, %v436_v31  ;;  %v444_v38 = vmul.f32 %v436_v31, %v436_v31  ;;  %v445_v39 = vmul.f32 %v437_v21, %v437_v21  ;;  %v633_v4 = vpop.permute.xlu0 %632 }
 0x12a   : > { %v678_v21 = vperm.slane %v1062_v24, 0 }
 0x12b   : > { %439 = vst [vmem:[%s1312_s17] sm:$0xff] %v438_v36  ;;  %441 = vadd.xlane.f32.xlu0 %v440_v37  ;;  %v446_v46 = vadd.f32 %v445_v39, %v444_v38 }
 0x12c   : > { %v635_v5 = vpop.permute.xlu1 %634 }
 0x12d   : > { %447 = vadd.xlane.f32.xlu1 %v446_v46  ;;  %v637_v16 = vsel %vm636_vm7, %v633_v4, %v635_v5  ;;  %v638_v17 = vsel %vm636_vm7, %v635_v5, %v633_v4 }
 0x12e   : > { %v646_v25 = vmul.f32 %v642_v12, %v637_v16  ;;  %v647_v28 = vmul.f32 %v643_v13, %v638_v17 }
 0x12f   : > { %v549_v52 = vpop.permute.xlu2 %548 }
 0x130   : > { %v550_v53 = vsel %vm407_vm3, %v547_v20, %v549_v52  ;;  %v551_v57 = vsel %vm407_vm3, %v549_v52, %v547_v20 }
 0x131   : > { %v558_v60 = vmul.f32 %v554_v50, %v551_v57  ;;  %v559_v61 = vmul.f32 %v555_v51, %v550_v53  ;;  %v757_v8 = vpop.permute.xlu0 %756  ;;  %v767_v50 = vperm.slane %v1075_v33, 1  ;;  %v799_v57 = vperm.slane %v1077_v48, 1 }
 0x133   : > { %v560_v62 = vadd.f32 %v558_v60, %v544_v58  ;;  %v561_v63 = vadd.f32 %v559_v61, %v545_v59 }
 0x135   : > { %v562_v0 = vpack.c.bf16 %v561_v63, %v560_v62  ;;  %v564_v1 = vadd.f32 %v561_v63, %v560_v62  ;;  %v568_v2 = vmul.f32 %v560_v62, %v560_v62  ;;  %v569_v3 = vmul.f32 %v561_v63, %v561_v63 }
 0x137   : > { %563 = vst [vmem:[%s1312_s17 + $0x8] sm:$0xff] %v562_v0  ;;  %565 = vadd.xlane.f32.xlu1 %v564_v1  ;;  %v759_v26 = vpop.permute.xlu2 %758  ;;  %v570_v27 = vadd.f32 %v569_v3, %v568_v2  ;;  %v775_v14 = vpop.permute.xlu1 %774 }
 0x138   : > { %v761_v51 = vsel %vm760_vm8, %v757_v8, %v759_v26  ;;  %v762_v54 = vsel %vm760_vm8, %v759_v26, %v757_v8 }
 0x139   : > { %571 = vadd.xlane.f32.xlu0 %v570_v27  ;;  %v777_v30 = vpop.permute.xlu0 %776  ;;  %v770_v63 = vmul.f32 %v766_v49, %v761_v51  ;;  %v771_v0 = vmul.f32 %v767_v50, %v762_v54 }
 0x13a   : > { %v778_v38 = vsel %vm636_vm7, %v775_v14, %v777_v30  ;;  %v779_v39 = vsel %vm636_vm7, %v777_v30, %v775_v14 }
 0x13b   : > { %v787_v53 = vmul.f32 %v783_v35, %v779_v39 }
 0x13d   : > { %v789_v4 = vadd.f32 %v787_v53, %v771_v0 }
 0x13f   : > { %v651_v6 = vpop.permute.xlu2 %650 }
 0x141   : > { %v791_v59 = vpop.permute.xlu0 %790 }
 0x144   : > { %v673_v36 = vpop.permute.xlu1 %672 }
 0x147   : > { %v653_v15 = vpop.permute.xlu2 %652 }
 0x148   : > { %v655_v18 = vsel %vm654_vm6, %v651_v6, %v653_v15  ;;  %v656_v19 = vsel %vm654_vm6, %v653_v15, %v651_v6 }
 0x149   : > { %v664_v22 = vmul.f32 %v660_v10, %v655_v18  ;;  %v665_v23 = vmul.f32 %v661_v11, %v656_v19  ;;  %v753_v10 = vpop.f32.mrf.mxu3 }
 0x14b   : > { %v666_v20 = vadd.f32 %v664_v22, %v646_v25  ;;  %v667_v31 = vadd.f32 %v665_v23, %v647_v28 }
 0x14d   : > { %v668_v42 = vadd.f32 %v666_v20, %v1268_v47  ;;  %v669_v44 = vadd.f32 %v667_v31, %v1262_v43  ;;  %v786_v47 = vmul.f32 %v782_v34, %v778_v38  ;;  %v798_v43 = vperm.slane %v1077_v48, 0 }
 0x14f   : > { %v671_v37 = vpop.permute.xlu2 %670  ;;  %v788_v27 = vadd.f32 %v786_v47, %v770_v63 }
 0x150   : > { %v674_v40 = vsel %vm389_vm1, %v671_v37, %v673_v36  ;;  %v675_v41 = vsel %vm389_vm1, %v673_v36, %v671_v37 }
 0x151   : > { %v682_v45 = vmul.f32 %v678_v21, %v675_v41  ;;  %v683_v46 = vmul.f32 %v679_v32, %v674_v40 }
 0x153   : > { %v684_v55 = vadd.f32 %v682_v45, %v668_v42  ;;  %v685_v52 = vadd.f32 %v683_v46, %v669_v44 }
 0x155   : > { %v686_v58 = vpack.c.bf16 %v685_v52, %v684_v55  ;;  %v688_v60 = vadd.f32 %v685_v52, %v684_v55  ;;  %v692_v61 = vmul.f32 %v684_v55, %v684_v55  ;;  %v693_v62 = vmul.f32 %v685_v52, %v685_v52 }
 0x157   : > { %687 = vst [vmem:[%s1312_s17 + $0x10] sm:$0xff] %v686_v58  ;;  %689 = vadd.xlane.f32.xlu2 %v688_v60  ;;  %v793_v1 = vpop.permute.xlu2 %792  ;;  %v694_v2 = vadd.f32 %v693_v62, %v692_v61 }
 0x158   : > { %v794_v3 = vsel %vm512_vm4, %v791_v59, %v793_v1  ;;  %v795_v26 = vsel %vm512_vm4, %v793_v1, %v791_v59 }
 0x159   : > { %v802_v5 = vmul.f32 %v798_v43, %v794_v3  ;;  %v803_v6 = vmul.f32 %v799_v57, %v795_v26  ;;  %695 = vadd.xlane.f32.xlu1 %v694_v2 }
 0x15b   : > { %v804_v7 = vadd.f32 %v802_v5, %v788_v27  ;;  %v805_v8 = vadd.f32 %v803_v6, %v789_v4 }
 0x15d   : > { %v806_v11 = vadd.f32 %v804_v7, %v734_v9  ;;  %v807_v12 = vadd.f32 %v805_v8, %v753_v10 }
 0x15f   : > { %v810_v13 = vadd.f32 %v807_v12, %v806_v11  ;;  %v808_v14 = vpack.c.bf16 %v807_v12, %v806_v11  ;;  %v814_v15 = vmul.f32 %v806_v11, %v806_v11  ;;  %v815_v16 = vmul.f32 %v807_v12, %v807_v12 }
 0x161   : > { %811 = vadd.xlane.f32.xlu0 %v810_v13  ;;  %809 = vst [vmem:[%s1312_s17 + $0x18] sm:$0xff] %v808_v14  ;;  %v816_v56 = vadd.f32 %v815_v16, %v814_v15  ;;  %s308_s17 = scalar_lea.vmem %s1391_s5, %s1017_s11 }
 0x163   : > { %817 = vadd.xlane.f32.xlu2 %v816_v56 }
 0x19e   : > { %v442_v18 = vpop.xlane.xlu0 %441 }
 0x1a0   : > { %v448_v17 = vpop.xlane.xlu1 %447 }
 0x1aa   : > { %v566_v19 = vpop.xlane.xlu1 %565 }
 0x1ab   : > { %v567_v24 = vadd.f32 %v566_v19, %v442_v18 }
 0x1ac   : > { %v572_v22 = vpop.xlane.xlu0 %571 }
 0x1ad   : > { %v573_v28 = vadd.f32 %v572_v22, %v448_v17 }
 0x1ca   : > { %v690_v23 = vpop.xlane.xlu2 %689 }
 0x1cb   : > { %v691_v29 = vadd.f32 %v690_v23, %v567_v24 }
 0x1cc   : > { %v696_v25 = vpop.xlane.xlu1 %695 }
 0x1cd   : > { %v697_v20 = vadd.f32 %v696_v25, %v573_v28 }
 0x1d4   : > { %v812_v30 = vpop.xlane.xlu0 %811 }
 0x1d5   : > { %v813_v31 = vadd.f32 %v812_v30, %v691_v29 }
 0x1d6   : > { %v818_v21 = vpop.xlane.xlu2 %817 }
 0x1d7   : > { %821 = vst.msk [vmem:[%s301_s14] sm:$0xff] %vm820_vm9, %v813_v31  ;;  %v819_v32 = vadd.f32 %v818_v21, %v697_v20 }
 0x1d9   : > { %822 = vst.msk [vmem:[%s308_s17] sm:$0xff] %vm820_vm9, %v819_v32 }
 0x1da PF: > { %s16_s20 = sadd.s32 1, %s1144_s20   ;;  %s1392_s18 = smov %s1140_s19 }
 0x1db   : > { %p13_p5 = scmp.ge.s32.totalorder %s16_s20, 4   ;;  %s1393_s19 = smov %s1395_s21 }
 0x1dd   :  { %15 = sbr.rel (!%p13_p5) target bundleno = 2 (0x2), region = 96 }

// kernel: upsample_forward.3
= control target key start
LH: loop header
LB: loop body
LE: loop exit
PB: predicated region body
PF: predicated region fallthrough
CT: control target
= control target key end

     0   :  { %s723_s15 = smov 0   ;;  %s725_s16 = smov 0   ;;  %s822_s0 = inlined_call_operand.vmem [shape: bf16[2,8,1024], index: 0, kind: input, shape index: {}]   ;;  %s823_s1 = inlined_call_operand.vmem [shape: f32[8,1], index: 1, kind: input, shape index: {}]   ;;  %s824_s2 = inlined_call_operand.vmem [shape: f32[8,1], index: 2, kind: input, shape index: {}]   ;;  %s825_s3 = inlined_call_operand.vmem [shape: f32[2,8,1024], index: 3, kind: input, shape index: {}]   ;;  %s826_s4 = inlined_call_operand.vmem [shape: f32[2,16,1024], index: 4, kind: output, shape index: {}]  }
   0x1   :  { %827 = sst [smem:[#allocation2_spill]] %s825_s3  ;;  %s727_s17 = smov 0  }
   0x2   :  { %s729_s18 = smov 0   ;;  %s731_s19 = smov 0  }
   0x3 LB: > { %s23_s20 = sadd.s32 1, %s687_s17  ;;  %s26_s21 = sadd.s32 1, %s691_s18  ;;  %s695_s19 = sphi %s731_s19, %s14_s19   ;;  %s691_s18 = sphi %s729_s18, %s832_s18   ;;  %s687_s17 = sphi %s727_s17, %s831_s17   ;;  %s683_s16 = sphi %s725_s16, %s830_s16   ;;  %s679_s15 = sphi %s723_s15, %s829_s15  }
   0x4   : > { %p24_p0 = scmp.ge.s32.totalorder %s23_s20, 2  ;;  %p583_p1 = scmp.ge.s32.totalorder %s695_s19, 1 }
   0x5   : > { %p252_p2 = scmp.lt.s32.totalorder %s695_s19, 5 }
   0x6   : > { %s834_s20 = smov (%p24_p0, %s23_s20), 0  ;;  %s836_s21 = smov (!%p24_p0, %s26_s21), %s691_s18 }
   0x7   : > { %p253_p3 = pnand %p583_p1, %p252_p2  ;;  %p28_p4 = scmp.ge.s32.totalorder %s836_s21, 2 }
   0x8   : > { %p312_p5 = scmp.lt.s32.totalorder (!%p253_p3), %s679_s15, 0  ;;  %p314_p6 = scmp.lt.s32.totalorder (!%p253_p3), %s683_s16, 1 }
   0x9   : > { %s838_s21 = smov (%p28_p4, %s836_s21), 0  ;;  %256 = sbr.rel (%p253_p3) target bundleno = 177 (0xb1), region = 36 }
   0xa   : > { %p358_p7 = scmp.lt.s32.totalorder (!%p253_p3), %s679_s15, 1  ;;  %s828_s3 = sld [smem:[#allocation2_spill]] (!%p253_p3) }
   0xb   : > { %p610_p8 = scmp.ge.s32.totalorder (!%p253_p3), %s679_s15, 1 }
   0xe   : > { %s313_s22 = scalar_select %p312_p5, %s679_s15, 0 }
   0xf   : > { %s840_s16 = smov (!%p314_p6, %s683_s16), 1 }
  0x10   : > { %s842_s22 = smov (!%p312_p5, %s313_s22), 0  ;;  %s588_s23 = sshll.u32 %s840_s16, 3 }
  0x11   : > { %s614_s24 = sshll.u32 %s840_s16, 6  ;;  %s587_s25 = sshll.u32 %s842_s22, 3 }
  0x12   : > { %s761_s28 = scalar_lea.vmem %s828_s3, %s614_s24  ;;  %s320_s29 = sadd.s32 %s588_s23, %s587_s25 }
  0x13   : > { %s330_s6 = scalar_lea.vmem %s823_s1, %s587_s25  ;;  %s589_s7 = sshll.u32 %s320_s29, 2 }
  0x14   : > { %s338_s10 = scalar_lea.vmem %s824_s2, %s587_s25  ;;  %s322_s13 = scalar_lea.vmem %s822_s0, %s589_s7 }
  0x15   : > { %s608_s14 = sshll.u32 %s840_s16, 4 }
  0x16   : > { %s359_s22 = scalar_select %p358_p7, %s679_s15, 1 }
  0x17   : > { %368 = sbr.rel (%p610_p8) target bundleno = 163 (0xa3), region = 40 }
  0x18   : > { %s607_s26 = sshll.u32 %s359_s22, 3 }
  0x19   : > { %s362_s24 = sadd.s32 %s608_s14, %s607_s26 }
  0x1a   : > { %s609_s27 = sshll.u32 %s362_s24, 3 }
  0x1b   : > { %s778_s30 = scalar_lea.vmem %s826_s4, %s609_s27 }
  0x1c   : > { %v381_v0 = vld [vmem:[%s330_s6] sm:$0xff]  ;;  %v697_v1 = vmov 0   ;;  %v370_v5 = vld [vmem:[%s322_s13 + $0x8] sm:$0xff]  ;;  %v371_v6 = vld [vmem:[%s322_s13 + $0x10] sm:$0xff] }
  0x1d   : > { %656 = vset.pattern.permute.xlu0 %v697_v1  ;;  %v395_v2 = vld [vmem:[%s338_s10] sm:$0xff]  ;;  %v375_v9 = vunpack.c.l.bf16 %v370_v5  ;;  %v372_v10 = vld [vmem:[%s322_s13 + $0x18] sm:$0xff]  ;;  %v376_v11 = vunpack.c.h.bf16 %v370_v5  ;;  %v377_v12 = vunpack.c.l.bf16 %v371_v6  ;;  %v378_v13 = vunpack.c.h.bf16 %v371_v6 }
  0x1e   : > { %384 = vperm.xlu0 %656, %v381_v0   ;;  %v369_v4 = vld [vmem:[%s322_s13] sm:$0xff]  ;;  %v379_v14 = vunpack.c.l.bf16 %v372_v10  ;;  %v380_v19 = vunpack.c.h.bf16 %v372_v10 }
  0x1f   : > { %v373_v7 = vunpack.c.l.bf16 %v369_v4  ;;  %v374_v8 = vunpack.c.h.bf16 %v369_v4 }
  0x26   : > { %398 = vperm.xlu0 %656, %v395_v2  }
  0x90   : > { %v385_v3 = vpop.permute.xlu0 %384 }
  0x91   : > { %v387_v15 = vmul.f32 %v385_v3, %v373_v7  ;;  %v388_v16 = vmul.f32 %v385_v3, %v374_v8  ;;  %v389_v17 = vmul.f32 %v385_v3, %v375_v9  ;;  %v390_v20 = vmul.f32 %v385_v3, %v376_v11 }
  0x92   : > { %v391_v21 = vmul.f32 %v385_v3, %v377_v12  ;;  %v392_v25 = vmul.f32 %v385_v3, %v378_v13  ;;  %v393_v27 = vmul.f32 %v385_v3, %v379_v14  ;;  %v394_v29 = vmul.f32 %v385_v3, %v380_v19 }
  0x98   : > { %v399_v18 = vpop.permute.xlu0 %398 }
  0x99   : > { %v401_v22 = vadd.f32 %v399_v18, %v387_v15  ;;  %v402_v23 = vadd.f32 %v399_v18, %v388_v16  ;;  %v403_v24 = vadd.f32 %v399_v18, %v389_v17  ;;  %v404_v26 = vadd.f32 %v399_v18, %v390_v20 }
  0x9a   : > { %v405_v28 = vadd.f32 %v399_v18, %v391_v21  ;;  %v406_v30 = vadd.f32 %v399_v18, %v392_v25  ;;  %v407_v31 = vadd.f32 %v399_v18, %v393_v27  ;;  %v408_v32 = vadd.f32 %v399_v18, %v394_v29 }
  0x9b   : > { %409 = vst [vmem:[%s778_s30] sm:$0xff] %v401_v22 }
  0x9c   : > { %410 = vst [vmem:[%s778_s30 + $0x8] sm:$0xff] %v402_v23 }
  0x9d   : > { %411 = vst [vmem:[%s778_s30 + $0x10] sm:$0xff] %v403_v24 }
  0x9e   : > { %412 = vst [vmem:[%s778_s30 + $0x18] sm:$0xff] %v404_v26 }
  0x9f   : > { %413 = vst [vmem:[%s778_s30 + $0x20] sm:$0xff] %v405_v28 }
  0xa0   : > { %414 = vst [vmem:[%s778_s30 + $0x28] sm:$0xff] %v406_v30 }
  0xa1   : > { %415 = vst [vmem:[%s778_s30 + $0x30] sm:$0xff] %v407_v31 }
  0xa2   : > { %416 = vst [vmem:[%s778_s30 + $0x38] sm:$0xff] %v408_v32 }
  0xa3 PF: > { %420 = sbr.rel (%p358_p7) target bundleno = 177 (0xb1), region = 44 }
  0xa8   : > { %v421_v33 = vld [vmem:[%s761_s28] sm:$0xff]  ;;  %v422_v34 = vld [vmem:[%s761_s28 + $0x8] sm:$0xff]  ;;  %v423_v35 = vld [vmem:[%s761_s28 + $0x10] sm:$0xff] }
  0xa9   : > { %429 = vst [vmem:[%s778_s30] sm:$0xff] %v421_v33  ;;  %v424_v36 = vld [vmem:[%s761_s28 + $0x18] sm:$0xff]  ;;  %v425_v37 = vld [vmem:[%s761_s28 + $0x20] sm:$0xff]  ;;  %v426_v38 = vld [vmem:[%s761_s28 + $0x28] sm:$0xff] }
  0xaa   : > { %430 = vst [vmem:[%s778_s30 + $0x8] sm:$0xff] %v422_v34  ;;  %v427_v39 = vld [vmem:[%s761_s28 + $0x30] sm:$0xff]  ;;  %v428_v40 = vld [vmem:[%s761_s28 + $0x38] sm:$0xff] }
  0xab   : > { %431 = vst [vmem:[%s778_s30 + $0x10] sm:$0xff] %v423_v35 }
  0xac   : > { %432 = vst [vmem:[%s778_s30 + $0x18] sm:$0xff] %v424_v36 }
  0xad   : > { %433 = vst [vmem:[%s778_s30 + $0x20] sm:$0xff] %v425_v37 }
  0xae   : > { %434 = vst [vmem:[%s778_s30 + $0x28] sm:$0xff] %v426_v38 }
  0xaf   : > { %435 = vst [vmem:[%s778_s30 + $0x30] sm:$0xff] %v427_v39 }
  0xb0   : > { %436 = vst [vmem:[%s778_s30 + $0x38] sm:$0xff] %v428_v40 }
  0xb1 PF: > { %s14_s19 = sadd.s32 1, %s695_s19   ;;  %s829_s15 = smov %s687_s17 }
  0xb2   : > { %p11_p9 = scmp.ge.s32.totalorder %s14_s19, 6   ;;  %s830_s16 = smov %s691_s18 }
  0xb3   : > { %s831_s17 = smov %s834_s20  ;;  %s832_s18 = smov %s838_s21 }
  0xb4   :  { %13 = sbr.rel (!%p11_p9) target bundleno = 3 (0x3), region = 83 }

</bundles_post_ra>
